<compile_context>
chip_gen: v5e
topology: v5e:2x2
jax: 0.10.0
libtpu: 0.0.40
codegen_flags: <defaults>
</compile_context>

<pallas_src>
import jax
import jax.numpy as jnp
from jax.experimental import pallas as pl
from jax.experimental.pallas import tpu as pltpu

_LANES = 1024   # lane-dense slab width (multiple of 128)
_TM = 512       # rows per block -> 512*1024*4 B = 2 MiB per array per block


def _linreg_kernel(w_ref, b_ref, x_ref, o_ref):
    # w_ref / b_ref are (1, 1) f32 scalars in SMEM; x_ref / o_ref are (tm, lanes)
    # VMEM tiles. Compute in f32 and cast explicitly to the output dtype.
    w = w_ref[0, 0]
    b = b_ref[0, 0]
    o_ref[...] = (w * x_ref[...] + b).astype(o_ref.dtype)


def _choose_tiling(n: int):
    """Return (padded_rows, lanes, tm) for n flattened elements."""
    lanes = _LANES
    rows = (n + lanes - 1) // lanes
    if rows <= _TM:
        # Single block covering the whole slab (block shape == full array dims,
        # so the (8,128) divisibility rule is satisfied for any row count).
        return rows, lanes, rows
    # Round rows up to a multiple of _TM so every block is full (no ragged tail).
    rows = ((rows + _TM - 1) // _TM) * _TM
    return rows, lanes, _TM


def linear_regression_forward(x: jax.Array, weight: jax.Array, bias: jax.Array) -> jax.Array:
    """y = weight * x + bias  (weight, bias are shape-(1,) params, like nn.Parameter(torch.randn(1)))."""
    orig_shape = x.shape
    orig_dtype = x.dtype
    n = x.size

    w2 = weight.reshape(1, 1).astype(jnp.float32)
    b2 = bias.reshape(1, 1).astype(jnp.float32)

    # Flatten to a lane-dense 2-D slab, padding the tail so every block is full.
    rows, lanes, tm = _choose_tiling(n)
    padded_len = rows * lanes
    flat = x.reshape(-1)
    if padded_len != n:
        flat = jnp.pad(flat, (0, padded_len - n))
    x2 = flat.reshape(rows, lanes)

    grid = (rows // tm,)

    out = pl.pallas_call(
        _linreg_kernel,
        out_shape=jax.ShapeDtypeStruct((rows, lanes), orig_dtype),
        grid=grid,
        in_specs=[
            pl.BlockSpec((1, 1), lambda i: (0, 0), memory_space=pltpu.SMEM),
            pl.BlockSpec((1, 1), lambda i: (0, 0), memory_space=pltpu.SMEM),
            pl.BlockSpec((tm, lanes), lambda i: (i, 0)),
        ],
        out_specs=pl.BlockSpec((tm, lanes), lambda i: (i, 0)),
        compiler_params=pltpu.CompilerParams(
            dimension_semantics=("parallel",),
        ),
    )(w2, b2, x2)

    # Strip padding and restore the caller's original shape.
    return out.reshape(-1)[:n].reshape(orig_shape)


if __name__ == "__main__":
    key = jax.random.PRNGKey(0)
    k_w, k_b, k_x = jax.random.split(key, 3)

    # Deterministic "parameters" (mirrors torch.randn(1) for weight and bias).
    weight = jax.random.normal(k_w, (1,), dtype=jnp.float32)
    bias = jax.random.normal(k_b, (1,), dtype=jnp.float32)

    # (N, 1) column-vector input as in the tutorial; big enough to exercise the
    # lane-dense slab path, still tiny memory-wise.
    x = jax.random.normal(k_x, (4096, 1), dtype=jnp.float32)
    y = jax.block_until_ready(linear_regression_forward(x, weight, bias))
    y_ref = weight[0] * x + bias[0]
    assert y.shape == x.shape and y.dtype == x.dtype
    assert jnp.allclose(y, y_ref, atol=1e-6, rtol=1e-6)

    # Ragged size (needs tail padding) and a non-column shape.
    x2 = jax.random.normal(k_x, (1000, 3), dtype=jnp.float32)
    y2 = jax.block_until_ready(linear_regression_forward(x2, weight, bias))
    assert y2.shape == x2.shape
    assert jnp.allclose(y2, weight[0] * x2 + bias[0], atol=1e-6, rtol=1e-6)

    # Size large enough to hit the multi-block (grid > 1) pipelined path.
    x3 = jax.random.normal(k_x, (600_000, 1), dtype=jnp.float32)
    y3 = jax.block_until_ready(linear_regression_forward(x3, weight, bias))
    assert y3.shape == x3.shape
    assert jnp.allclose(y3, weight[0] * x3 + bias[0], atol=1e-6, rtol=1e-6)

    print("KERNEL_OK")
</pallas_src>

<mosaic_0001>
module attributes {stable_mosaic.version = 11 : i64} {
  func.func @_linreg_kernel(%arg0: i32, %arg1: memref<1x1xf32, #tpu.memory_space<smem>>, %arg2: memref<1x1xf32, #tpu.memory_space<smem>>, %arg3: memref<4x1024xf32, #tpu.memory_space<vmem>>, %arg4: memref<4x1024xf32, #tpu.memory_space<vmem>>) attributes {dimension_semantics = [#tpu.dimension_semantics<parallel>], iteration_bounds = array<i64: 1>, scalar_prefetch = 0 : i64, scratch_operands = 0 : i64, tpu.core_type = #tpu.core_type<tc>, window_params = [{transform_indices = @transform_0, window_bounds = array<i64: 1, 1>}, {transform_indices = @transform_1, window_bounds = array<i64: 1, 1>}, {transform_indices = @transform_2, window_bounds = array<i64: 4, 1024>}, {transform_indices = @transform_3, window_bounds = array<i64: 4, 1024>}]} {
    %c0 = arith.constant 0 : index
    %c0_0 = arith.constant 0 : index
    %0 = memref.load %arg1[%c0, %c0_0] : memref<1x1xf32, #tpu.memory_space<smem>>
    %c0_1 = arith.constant 0 : index
    %c0_2 = arith.constant 0 : index
    %1 = memref.load %arg2[%c0_1, %c0_2] : memref<1x1xf32, #tpu.memory_space<smem>>
    %c0_3 = arith.constant 0 : index
    %c0_4 = arith.constant 0 : index
    %2 = vector.load %arg3[%c0_3, %c0_4] : memref<4x1024xf32, #tpu.memory_space<vmem>>, vector<4x1024xf32>
    %3 = vector.broadcast %0 : f32 to vector<4x1024xf32>
    %4 = arith.mulf %3, %2 : vector<4x1024xf32>
    %5 = vector.broadcast %1 : f32 to vector<4x1024xf32>
    %6 = arith.addf %4, %5 : vector<4x1024xf32>
    %c0_5 = arith.constant 0 : index
    %c0_6 = arith.constant 0 : index
    %7 = vector.load %arg4[%c0_5, %c0_6] : memref<4x1024xf32, #tpu.memory_space<vmem>>, vector<4x1024xf32>
    tpu.vector_store %arg4[%c0_5, %c0_6], %6 {strides = array<i32>} : memref<4x1024xf32, #tpu.memory_space<vmem>>, vector<4x1024xf32>,
    return
  }
  func.func @transform_0(%arg0: i32) -> (i32, i32) {
    %c0_i32 = arith.constant 0 : i32
    %c0_i32_0 = arith.constant 0 : i32
    %c0_i32_1 = arith.constant 0 : i32
    return %c0_i32, %c0_i32_0 : i32, i32
  }
  func.func @transform_1(%arg0: i32) -> (i32, i32) {
    %c0_i32 = arith.constant 0 : i32
    %c0_i32_0 = arith.constant 0 : i32
    %c0_i32_1 = arith.constant 0 : i32
    return %c0_i32, %c0_i32_0 : i32, i32
  }
  func.func @transform_2(%arg0: i32) -> (i32, i32) {
    %c0_i32 = arith.constant 0 : i32
    %c0_i32_0 = arith.constant 0 : i32
    return %arg0, %c0_i32 : i32, i32
  }
  func.func @transform_3(%arg0: i32) -> (i32, i32) {
    %c0_i32 = arith.constant 0 : i32
    %c0_i32_0 = arith.constant 0 : i32
    return %arg0, %c0_i32 : i32, i32
  }
}

</mosaic_0001>

<bundles_post_ra>
// kernel: tpu_custom_call.1
= control target key start
LH: loop header
LB: loop body
LE: loop exit
PB: predicated region body
PF: predicated region fallthrough
CT: control target
= control target key end

     0   :  { %10 = vsyncpa [#allocation5], 0  ;;  %s156_s0 = inlined_call_operand.<no memory space> [shape: f32[1,1], index: 0, kind: input, shape index: {}]   ;;  %s157_s1 = inlined_call_operand.<no memory space> [shape: f32[1,1], index: 1, kind: input, shape index: {}]   ;;  %s158_s2 = inlined_call_operand.hbm [shape: f32[4,1024], index: 2, kind: input, shape index: {}]   ;;  %s159_s3 = inlined_call_operand.hbm [shape: f32[4,1024], index: 3, kind: output, shape index: {}]  }
   0x1   :  { %11 = vsyncpa [#allocation6], 0  ;;  %s21_s14 = sshll.u32 %s158_s2, 4  ;;  %s122_s15 = smov [#allocation4]   ;;  %s22_s14 = int_to_ptr.hbm [resolvable:$true] %s21_s14 }
   0x2   :  { %s23_s16 = sshll.u32 %s122_s15, 4  ;;  %s24_s16 = int_to_ptr.vmem [resolvable:$true] %s23_s16 }
   0x3   :  { %26 = dma.hbm_to_vmem [thread:$0]  %s22_s14, 512, %s24_s16, [#allocation5]  }
   0x4   :  { %118 = dma.done.wait [#allocation5], 512  }
   0x5   :  { %119 = vsyncadd [#allocation5], 4294966784  ;;  %v37_v0 = vstv %s156_s0  ;;  %v33_v1 = vld [vmem:[#allocation4] sm:$0xff]  ;;  %v42_v2 = vstv %s157_s1  ;;  %v34_v3 = vld [vmem:[#allocation4 + $0x8] sm:$0xff]  ;;  %s123_s2 = smov [#allocation7]   ;;  %s58_s0 = sshll.u32 %s159_s3, 4  ;;  %s59_s0 = int_to_ptr.hbm [resolvable:$true] %s58_s0 }
   0x6   :  { %v35_v4 = vld [vmem:[#allocation4 + $0x10] sm:$0xff]  ;;  %v38_v5 = vmul.f32 %v37_v0, %v33_v1  ;;  %v39_v6 = vmul.f32 %v37_v0, %v34_v3  ;;  %v36_v8 = vld [vmem:[#allocation4 + $0x18] sm:$0xff]  ;;  %s56_s21 = sshll.u32 %s123_s2, 4  ;;  %s57_s21 = int_to_ptr.vmem [resolvable:$true] %s56_s21 }
   0x7   :  { %v40_v7 = vmul.f32 %v37_v0, %v35_v4  ;;  %v41_v9 = vmul.f32 %v37_v0, %v36_v8 }
   0x8   :  { %v43_v10 = vadd.f32 %v42_v2, %v38_v5  ;;  %v44_v11 = vadd.f32 %v42_v2, %v39_v6 }
   0x9   :  { %v45_v12 = vadd.f32 %v42_v2, %v40_v7  ;;  %v46_v13 = vadd.f32 %v42_v2, %v41_v9 }
   0xa   :  { %47 = vst [vmem:[#allocation7] sm:$0xff] %v43_v10 }
   0xb   :  { %48 = vst [vmem:[#allocation7 + $0x8] sm:$0xff] %v44_v11 }
   0xc   :  { %49 = vst [vmem:[#allocation7 + $0x10] sm:$0xff] %v45_v12 }
   0xd   :  { %50 = vst [vmem:[#allocation7 + $0x18] sm:$0xff] %v46_v13 }
   0xe   :  { %61 = dma.vmem_to_hbm [thread:$0]  %s57_s21, 512, %s59_s0, [#allocation6]  }
   0xf   :  { %120 = dma.done.wait [#allocation6], 512  }
  0x10   :  { %121 = vsyncadd [#allocation6], 4294966784 }
  0x11   :  { %66 = vsyncpa [#allocation5], 1 }
  0x12   :  { %67 = vsyncpa [#allocation6], 1 }

</bundles_post_ra>
